<compile_context>
chip_gen: v5e
topology: v5e:2x2
jax: 0.10.0
libtpu: 0.0.40
codegen_flags: <defaults>
</compile_context>

<pallas_src>
import functools
import math

import jax
import jax.numpy as jnp
from jax.experimental import pallas as pl
from jax.experimental.pallas import tpu as pltpu


_LANES = 128
_SUBLANES = 8


def _tpu_hw_params():
    """(tensorcores_per_device, vmem_capacity_bytes) with safe defaults.

    Defaults are conservative (1 core, 64 MiB VMEM = v7x per-TC) so a failed
    query only costs performance, never correctness or VMEM overflow.
    """
    num_cores = 1
    vmem_bytes = 64 * 1024 * 1024
    try:
        vb = getattr(pltpu.get_tpu_info(), "vmem_capacity_bytes", None)
        if isinstance(vb, int) and vb > 0:
            vmem_bytes = vb
    except Exception:
        pass
    try:
        kind = jax.devices()[0].device_kind.lower()
        # Chips exposing 2 TensorCores behind one JAX device (megacore / v7x).
        if ("v7" in kind or "7x" in kind or "v4" in kind
                or "v5p" in kind or "v5 p" in kind):
            num_cores = 2
    except Exception:
        pass
    return num_cores, vmem_bytes


def _mse_partial_kernel(o_ref, t_ref, out_ref, *, block_rows, chunk_rows,
                        rows_total, num_blocks, nb_per_core, needs_mask):
    i = pl.program_id(1)

    # Zero this core's (8, 128) accumulator tile at the start of its range.
    @pl.when(i == 0)
    def _():
        out_ref[...] = jnp.zeros_like(out_ref)

    if block_rows < _SUBLANES:
        # Tiny full-extent block (< 8 rows): exactly one grid step, no mask.
        d = o_ref[...].astype(jnp.float32) - t_ref[...].astype(jnp.float32)
        out_ref[:block_rows, :] += d * d
        return

    nchunks = block_rows // chunk_rows
    unroll = min(8, nchunks)

    def partial_sum(masked, g):
        # Register-resident (8, 128) accumulator; 2 input-vreg loads and a
        # handful of VPU ops per chunk -> HBM DMA stays the binding resource.
        def body(k, acc):
            r = pl.multiple_of(k * chunk_rows, chunk_rows)
            o = o_ref[pl.ds(r, chunk_rows), :].astype(jnp.float32)
            t = t_ref[pl.ds(r, chunk_rows), :].astype(jnp.float32)
            d = o - t
            d2 = d * d
            if masked:
                row_ids = (jax.lax.broadcasted_iota(jnp.int32, d2.shape, 0)
                           + g * block_rows + r)
                d2 = jnp.where(row_ids < rows_total, d2, 0.0)
            if chunk_rows > _SUBLANES:
                d2 = jnp.sum(
                    d2.reshape(chunk_rows // _SUBLANES, _SUBLANES, _LANES),
                    axis=0)
            return acc + d2

        return jax.lax.fori_loop(
            0, nchunks, body,
            jnp.zeros((_SUBLANES, _LANES), jnp.float32), unroll=unroll)

    if not needs_mask:
        out_ref[...] += partial_sum(False, None)
    else:
        # Only the last real block (possibly ragged) and the odd-split dummy
        # block need the iota mask; interior blocks accumulate unmasked.
        g = pl.program_id(0) * nb_per_core + i
        is_edge = g >= (num_blocks - 1)

        @pl.when(jnp.logical_not(is_edge))
        def _():
            out_ref[...] += partial_sum(False, g)

        @pl.when(is_edge)
        def _():
            out_ref[...] += partial_sum(True, g)


def pose_loss(output, target, use_target_weight=False):
    """JAX/Pallas equivalent of PoseLoss.forward.

    nn.MSELoss(size_average=True) averages over every element of the
    flattened (B, -1) views; the trailing .mean() on a scalar is a no-op, so
    the loss is mean((output - target)**2) over all elements.

    Accumulation is done in float32 (>= torch half-precision MSELoss
    accuracy). `use_target_weight` is stored-but-unused by the reference
    forward; it is accepted here only for signature parity.
    """
    del use_target_weight  # matches the reference forward, which ignores it
    assert output.shape == target.shape
    total = math.prod(target.shape)
    if total == 0:
        return jnp.float32(float("nan"))  # torch mean over empty -> nan

    if total % _LANES != 0:
        # TODO(synk): non-128-divisible element counts use a fused XLA
        # reduction (one HBM pass) instead of feeding a prefix slice into the
        # Pallas call, which would materialize a near-full copy of both inputs.
        d = (output.reshape(-1).astype(jnp.float32)
             - target.reshape(-1).astype(jnp.float32))
        return jnp.sum(d * d) / jnp.float32(total)

    rows_total = total // _LANES
    o2 = output.reshape(rows_total, _LANES)   # free lane-dense view
    t2 = target.reshape(rows_total, _LANES)

    num_cores_hw, vmem_bytes = _tpu_hw_params()

    # Sublane packing of the input dtype: 8 (32-bit), 16 (bf16/f16), 32 (i8).
    itemsize = int(jnp.dtype(output.dtype).itemsize)
    packing = max(_SUBLANES, (4 // max(itemsize, 1)) * _SUBLANES)

    # Block size: ~4 MiB per input block; 8 MiB where VMEM allows (v5e/v6e
    # with 128 MiB), never on 64-MiB-per-TC v7x. Input double-buffering is
    # 2 inputs x 2 bufs x block -> 16 / 32 MiB, under the scoped limit below.
    if vmem_bytes >= 96 * 1024 * 1024:
        target_block_bytes = 8 * 1024 * 1024
        vmem_limit = 40 * 1024 * 1024
    else:
        target_block_bytes = 4 * 1024 * 1024
        vmem_limit = 32 * 1024 * 1024
    max_block_rows = target_block_bytes // (_LANES * itemsize)

    if rows_total < _SUBLANES:
        block_rows = rows_total                       # tiny full-extent slab
    else:
        per_core_rows = pl.cdiv(rows_total, num_cores_hw)
        cand = max(_SUBLANES, (per_core_rows // packing) * packing)
        block_rows = min(max_block_rows, cand)

    num_blocks = pl.cdiv(rows_total, block_rows)
    num_cores = min(num_cores_hw, num_blocks)         # never schedule idle core
    nb_per_core = pl.cdiv(num_blocks, num_cores)
    needs_mask = (num_cores * nb_per_core * block_rows != rows_total)
    clamp_needed = (num_cores * nb_per_core != num_blocks)
    chunk_rows = (math.gcd(block_rows, packing)
                  if block_rows >= _SUBLANES else block_rows)

    def in_index_map(c, i):
        g = c * nb_per_core + i
        if clamp_needed:
            # Odd split: the trailing dummy block re-maps onto valid data and
            # is fully zeroed in-kernel by the row mask.
            g = jnp.minimum(g, num_blocks - 1)
        return (g, 0)

    kernel = functools.partial(
        _mse_partial_kernel,
        block_rows=block_rows,
        chunk_rows=chunk_rows,
        rows_total=rows_total,
        num_blocks=num_blocks,
        nb_per_core=nb_per_core,
        needs_mask=needs_mask,
    )

    partial_sums = pl.pallas_call(
        kernel,
        out_shape=jax.ShapeDtypeStruct((num_cores, _SUBLANES, _LANES),
                                       jnp.float32),
        grid_spec=pltpu.PrefetchScalarGridSpec(
            num_scalar_prefetch=0,
            grid=(num_cores, nb_per_core),
            in_specs=[
                pl.BlockSpec((block_rows, _LANES), in_index_map),
                pl.BlockSpec((block_rows, _LANES), in_index_map),
            ],
            # The (8, 128) per-core accumulator lives in the output block
            # itself (revisited across the inner axis) -> no VMEM scratch.
            out_specs=pl.BlockSpec((None, _SUBLANES, _LANES),
                                   lambda c, i: (c, 0, 0)),
        ),
        compiler_params=pltpu.CompilerParams(
            dimension_semantics=("parallel", "arbitrary"),
            vmem_limit_bytes=vmem_limit,
        ),
    )(o2, t2)

    return jnp.sum(partial_sums) / jnp.float32(total)


if __name__ == "__main__":
    key = jax.random.PRNGKey(0)
    k1, k2 = jax.random.split(key)

    # Small heatmap-like shapes consistent with a pose-estimation head.
    B, C, H, W = 2, 4, 16, 16
    output = jax.random.normal(k1, (B, C, H, W), dtype=jnp.float32)
    target = jax.random.normal(k2, (B, C, H, W), dtype=jnp.float32)

    loss = pose_loss(output, target, use_target_weight=False)
    jax.block_until_ready(loss)

    # Reference in plain JAX (same semantics as nn.MSELoss mean).
    ref = jnp.mean((output.reshape(B, -1) - target.reshape(B, -1)) ** 2)
    assert jnp.allclose(loss, ref, rtol=1e-5, atol=1e-5), (loss, ref)

    print("KERNEL_OK")
</pallas_src>

<mosaic_0001>
module attributes {stable_mosaic.version = 11 : i64} {
  func.func @_mse_partial_kernel(%arg0: i32, %arg1: i32, %arg2: memref<16x128xf32, #tpu.memory_space<vmem>>, %arg3: memref<16x128xf32, #tpu.memory_space<vmem>>, %arg4: memref<1x8x128xf32, #tpu.memory_space<vmem>>) attributes {dimension_semantics = [#tpu.dimension_semantics<parallel>, #tpu.dimension_semantics<arbitrary>], iteration_bounds = array<i64: 1, 1>, scalar_prefetch = 0 : i64, scratch_operands = 0 : i64, tpu.core_type = #tpu.core_type<tc>, window_params = [{transform_indices = @transform_0, window_bounds = array<i64: 16, 128>}, {transform_indices = @transform_1, window_bounds = array<i64: 16, 128>}, {transform_indices = @transform_2, window_bounds = array<i64: 1, 8, 128>}]} {
    %c0_i32 = arith.constant 0 : i32
    %0 = arith.cmpi eq, %arg1, %c0_i32 : i32
    %1 = arith.extui %0 : i1 to i32
    %c0_i32_0 = arith.constant 0 : i32
    %2 = arith.cmpi ne, %1, %c0_i32_0 : i32
    scf.if %2 {
      %cst_12 = arith.constant 0.000000e+00 : f32
      %28 = vector.broadcast %cst_12 : f32 to vector<8x128xf32>
      %c0_13 = arith.constant 0 : index
      %c0_14 = arith.constant 0 : index
      %c0_15 = arith.constant 0 : index
      %29 = vector.load %arg4[%c0_13, %c0_14, %c0_15] : memref<1x8x128xf32, #tpu.memory_space<vmem>>, vector<1x8x128xf32>
      %30 = vector.shape_cast %29 : vector<1x8x128xf32> to vector<8x128xf32>
      %31 = vector.shape_cast %28 : vector<8x128xf32> to vector<1x8x128xf32>
      tpu.vector_store %arg4[%c0_13, %c0_14, %c0_15], %31 {strides = array<i32>} : memref<1x8x128xf32, #tpu.memory_space<vmem>>, vector<1x8x128xf32>,
    } else {
    }
    %c0 = arith.constant 0 : index
    %c0_1 = arith.constant 0 : index
    %c0_2 = arith.constant 0 : index
    %3 = vector.load %arg4[%c0, %c0_1, %c0_2] : memref<1x8x128xf32, #tpu.memory_space<vmem>>, vector<1x8x128xf32>
    %4 = vector.shape_cast %3 : vector<1x8x128xf32> to vector<8x128xf32>
    %cst = arith.constant 0.000000e+00 : f32
    %5 = vector.broadcast %cst : f32 to vector<8x128xf32>
    %c0_i32_3 = arith.constant 0 : i32
    %c8_i32 = arith.constant 8 : i32
    %6 = arith.muli %c0_i32_3, %c8_i32 : i32
    %7 = tpu.assume_multiple %6, 8 : i32
    %8 = arith.index_cast %7 : i32 to index
    %c0_4 = arith.constant 0 : index
    %9 = vector.load %arg2[%8, %c0_4] : memref<16x128xf32, #tpu.memory_space<vmem>>, vector<8x128xf32>
    %10 = arith.index_cast %7 : i32 to index
    %c0_5 = arith.constant 0 : index
    %11 = vector.load %arg3[%10, %c0_5] : memref<16x128xf32, #tpu.memory_space<vmem>>, vector<8x128xf32>
    %12 = arith.subf %9, %11 : vector<8x128xf32>
    %13 = arith.mulf %12, %12 : vector<8x128xf32>
    %14 = arith.addf %5, %13 : vector<8x128xf32>
    %c1_i32 = arith.constant 1 : i32
    %c8_i32_6 = arith.constant 8 : i32
    %15 = arith.muli %c1_i32, %c8_i32_6 : i32
    %16 = tpu.assume_multiple %15, 8 : i32
    %17 = arith.index_cast %16 : i32 to index
    %c0_7 = arith.constant 0 : index
    %18 = vector.load %arg2[%17, %c0_7] : memref<16x128xf32, #tpu.memory_space<vmem>>, vector<8x128xf32>
    %19 = arith.index_cast %16 : i32 to index
    %c0_8 = arith.constant 0 : index
    %20 = vector.load %arg3[%19, %c0_8] : memref<16x128xf32, #tpu.memory_space<vmem>>, vector<8x128xf32>
    %21 = arith.subf %18, %20 : vector<8x128xf32>
    %22 = arith.mulf %21, %21 : vector<8x128xf32>
    %23 = arith.addf %14, %22 : vector<8x128xf32>
    %c2_i32 = arith.constant 2 : i32
    %24 = arith.addf %4, %23 : vector<8x128xf32>
    %c0_9 = arith.constant 0 : index
    %c0_10 = arith.constant 0 : index
    %c0_11 = arith.constant 0 : index
    %25 = vector.load %arg4[%c0_9, %c0_10, %c0_11] : memref<1x8x128xf32, #tpu.memory_space<vmem>>, vector<1x8x128xf32>
    %26 = vector.shape_cast %25 : vector<1x8x128xf32> to vector<8x128xf32>
    %27 = vector.shape_cast %24 : vector<8x128xf32> to vector<1x8x128xf32>
    tpu.vector_store %arg4[%c0_9, %c0_10, %c0_11], %27 {strides = array<i32>} : memref<1x8x128xf32, #tpu.memory_space<vmem>>, vector<1x8x128xf32>,
    return
  }
  func.func @transform_0(%arg0: i32, %arg1: i32) -> (i32, i32) {
    %c1_i32 = arith.constant 1 : i32
    %0 = arith.muli %arg0, %c1_i32 : i32
    %1 = arith.addi %0, %arg1 : i32
    %c0_i32 = arith.constant 0 : i32
    %c0_i32_0 = arith.constant 0 : i32
    return %1, %c0_i32 : i32, i32
  }
  func.func @transform_1(%arg0: i32, %arg1: i32) -> (i32, i32) {
    %c1_i32 = arith.constant 1 : i32
    %0 = arith.muli %arg0, %c1_i32 : i32
    %1 = arith.addi %0, %arg1 : i32
    %c0_i32 = arith.constant 0 : i32
    %c0_i32_0 = arith.constant 0 : i32
    return %1, %c0_i32 : i32, i32
  }
  func.func @transform_2(%arg0: i32, %arg1: i32) -> (i32, i32, i32) {
    %c0_i32 = arith.constant 0 : i32
    %c0_i32_0 = arith.constant 0 : i32
    %c0_i32_1 = arith.constant 0 : i32
    return %arg0, %c0_i32, %c0_i32_0 : i32, i32, i32
  }
}

</mosaic_0001>

<bundles_post_ra>
// kernel: tpu_custom_call.1
= control target key start
LH: loop header
LB: loop body
LE: loop exit
PB: predicated region body
PF: predicated region fallthrough
CT: control target
= control target key end

     0   :  { %7 = vsyncpa [#allocation3], 0  ;;  %s207_s0 = inlined_call_operand.hbm [shape: f32[16,128], index: 0, kind: input, shape index: {}]   ;;  %s208_s1 = inlined_call_operand.hbm [shape: f32[16,128], index: 1, kind: input, shape index: {}]   ;;  %s209_s2 = inlined_call_operand.hbm [shape: f32[1,8,128], index: 2, kind: output, shape index: {}]  }
   0x1   :  { %8 = vsyncpa [#allocation6], 0 }
   0x2   :  { %9 = vsyncpa [#allocation4], 0  ;;  %s18_s11 = sshll.u32 %s207_s0, 4  ;;  %s178_s12 = smov [#allocation2]   ;;  %s19_s11 = int_to_ptr.hbm [resolvable:$true] %s18_s11 }
   0x3   :  { %s20_s13 = sshll.u32 %s178_s12, 4  ;;  %s35_s16 = sshll.u32 %s208_s1, 4  ;;  %s21_s13 = int_to_ptr.vmem [resolvable:$true] %s20_s13  ;;  %s36_s16 = int_to_ptr.hbm [resolvable:$true] %s35_s16 }
   0x4   :  { %s179_s17 = smov 128   ;;  %s180_s18 = smov 8  }
   0x5   :  { %26 = dma.hbm_to_vmem [thread:$0]  %s19_s11, 256, %s21_s13, [#allocation3], %s179_s17, %s179_s17, %s180_s18  }
   0x6   :  { %s181_s19 = smov [#allocation5]  }
   0x7   :  { %s37_s20 = sshll.u32 %s181_s19, 4  ;;  %s38_s20 = int_to_ptr.vmem [resolvable:$true] %s37_s20 }
   0x8   :  { %43 = dma.hbm_to_vmem [thread:$0]  %s36_s16, 256, %s38_s20, [#allocation6], %s179_s17, %s179_s17, %s180_s18  }
   0x9   :  { %172 = dma.done.wait [#allocation3], 256  }
   0xa   :  { %173 = vsyncadd [#allocation3], 4294967040 }
   0xb   :  { %174 = dma.done.wait [#allocation6], 256  }
   0xc   :  { %175 = vsyncadd [#allocation6], 4294967040  ;;  %v62_v0 = vld [vmem:[#allocation2] sm:$0xff]  ;;  %v63_v1 = vld [vmem:[#allocation5] sm:$0xff]  ;;  %s182_s0 = smov [#allocation7]   ;;  %s83_s23 = sshll.u32 %s209_s2, 4  ;;  %s84_s23 = int_to_ptr.hbm [resolvable:$true] %s83_s23 }
   0xd   :  { %v68_v2 = vld [vmem:[#allocation2 + $0x8] sm:$0xff]  ;;  %v64_v3 = vsub.f32 %v62_v0, %v63_v1  ;;  %v70_v4 = vld [vmem:[#allocation5 + $0x8] sm:$0xff]  ;;  %s81_s1 = sshll.u32 %s182_s0, 4  ;;  %s82_s1 = int_to_ptr.vmem [resolvable:$true] %s81_s1 }
   0xe   :  { %v71_v5 = vsub.f32 %v68_v2, %v70_v4 }
   0xf   :  { %v65_v6 = vmul.f32 %v64_v3, %v64_v3 }
  0x10   :  { %v72_v7 = vmul.f32 %v71_v5, %v71_v5 }
  0x12   :  { %v73_v8 = vadd.f32 %v72_v7, %v65_v6 }
  0x14   :  { %75 = vst [vmem:[#allocation7] sm:$0xff] %v73_v8 }
  0x15   :  { %86 = dma.vmem_to_hbm [thread:$0]  %s82_s1, 128, %s84_s23, [#allocation4]  }
  0x16   :  { %176 = dma.done.wait [#allocation4], 128  }
  0x17   :  { %177 = vsyncadd [#allocation4], 4294967168 }
  0x18   :  { %91 = vsyncpa [#allocation3], 1 }
  0x19   :  { %92 = vsyncpa [#allocation6], 1 }
  0x1a   :  { %93 = vsyncpa [#allocation4], 1 }

</bundles_post_ra>
